<compile_context>
chip_gen: v7x
topology: tpu7x:2x2x1
jax: 0.10.0
libtpu: 0.0.40
codegen_flags: <defaults>
</compile_context>

<pallas_src>
import jax
import jax.numpy as jnp
from jax.experimental import pallas as pl
from jax.experimental.pallas import tpu as pltpu

EMB_DIM = 1024     # embedding_net output dim / FcBlock input_dim
BOTTLENECK = 512   # FcBlock num_bottleneck / ClassBlock input_dim
CLASS_NUM = 1      # SiameseNet classifier class_num
NPAD = 128         # class dim zero-padded to one lane tile (lane-dense store)
BN_EPS = 1e-5
TB_MAX = 256       # rows per grid step: 2x(~3 MiB) double-buffered activation
                   # blocks + <1 MiB resident weights << 32 MiB scoped VMEM.


def _round_up(x, m):
    return (x + m - 1) // m * m


def _siamese_head_kernel(e1_ref, e2_ref, wq_ref, wsc_ref, bfc_ref,
                         wcls_ref, bcls_ref, feat_ref, logit_ref):
    # feature = (emb1 - emb2)**2, kept f32 and written out.
    diff = e1_ref[...] - e2_ref[...]
    feat = diff * diff
    feat_ref[...] = feat

    # FcBlock: Linear(1024->512) with inference-mode BatchNorm1d pre-folded.
    # Weight streamed as per-output-channel int8 (VMEM-resident across batch
    # tiles via constant index_map); int values <= 127 are exact in bf16, so
    # the dequant scale can be folded into the epilogue after the f32-accum
    # bf16 MXU matmul.  Dropout(p=0.5) is identity in eval mode.
    w = wq_ref[...].astype(jnp.float32).astype(jnp.bfloat16)
    h = jnp.dot(feat.astype(jnp.bfloat16), w,
                preferred_element_type=jnp.float32)
    h = h * wsc_ref[...] + bfc_ref[...]
    h = jnp.where(h >= 0, h, 0.1 * h)          # LeakyReLU(0.1) per FcBlock

    # ClassBlock: Linear(512->1).  class_num == 1, so run it on the VPU/XLU as
    # a lane reduction instead of streaming a 128x zero-padded MXU weight.
    logit = jnp.sum(h * wcls_ref[...], axis=-1, keepdims=True) + bcls_ref[...]
    # Lane-dense (TB, 128) store (unmasked vst); the real class lane is sliced
    # outside the kernel.
    logit_ref[...] = jnp.broadcast_to(logit, logit_ref.shape)


def prepare_params(key):
    """One-time parameter prep (NOT on the forward hot path):
    PyTorch-layout weights are BN-folded, transposed to (in, out) and
    quantized / reshaped here."""
    k_fc, k_bn, k_cls = jax.random.split(key, 3)

    # FcBlock Linear(1024,512): kaiming_normal(a=0, mode='fan_out'), bias=0.
    w_fc = jax.random.normal(k_fc, (BOTTLENECK, EMB_DIM), jnp.float32) \
        * jnp.sqrt(2.0 / BOTTLENECK)
    b_fc = jnp.zeros((BOTTLENECK,), jnp.float32)

    # BatchNorm1d(512): weight ~ N(1, 0.02), bias=0, running stats (0, 1).
    gamma = 1.0 + 0.02 * jax.random.normal(k_bn, (BOTTLENECK,), jnp.float32)
    beta = jnp.zeros((BOTTLENECK,), jnp.float32)
    run_mean = jnp.zeros((BOTTLENECK,), jnp.float32)
    run_var = jnp.ones((BOTTLENECK,), jnp.float32)

    # ClassBlock Linear(512,1): weight ~ N(0, 0.001), bias=0.
    w_cls = 0.001 * jax.random.normal(k_cls, (CLASS_NUM, BOTTLENECK), jnp.float32)
    b_cls = jnp.zeros((CLASS_NUM,), jnp.float32)

    # Fold inference-mode BN into the fc Linear.
    scale = gamma / jnp.sqrt(run_var + BN_EPS)           # (512,)
    w_folded = (w_fc * scale[:, None]).T                 # (1024, 512) (in, out)
    b_folded = (b_fc - run_mean) * scale + beta          # (512,)

    # Per-output-channel symmetric int8 quantization of the fc weight
    # (halves the dominant HBM weight stream; scale applied post-matmul).
    absmax = jnp.max(jnp.abs(w_folded), axis=0, keepdims=True)      # (1, 512)
    qscale = jnp.where(absmax > 0, absmax / 127.0, 1.0)
    w_q = jnp.clip(jnp.round(w_folded / qscale), -127, 127).astype(jnp.int8)

    return dict(
        w_fc_q=w_q,                                               # (1024, 512) int8
        w_fc_scale=qscale.astype(jnp.float32),                    # (1, 512)    f32
        b_fc=b_folded.reshape(1, BOTTLENECK).astype(jnp.float32), # (1, 512)    f32
        w_cls=w_cls.reshape(1, BOTTLENECK).astype(jnp.float32),   # (1, 512)    f32
        b_cls=b_cls.reshape(1, 1).astype(jnp.float32),            # (1, 1)      f32
        w_fc_ref=w_folded,                                        # f32, test-only
    )


@jax.jit
def _siamese_head(emb1, emb2, params):
    B = emb1.shape[0]
    TB = min(TB_MAX, _round_up(B, 8))
    Bp = _round_up(B, TB)
    if Bp != B:
        emb1 = jnp.pad(emb1, ((0, Bp - B), (0, 0)))
        emb2 = jnp.pad(emb2, ((0, Bp - B), (0, 0)))
    n_steps = Bp // TB

    flops = 2 * Bp * EMB_DIM * BOTTLENECK + 4 * Bp * BOTTLENECK
    bytes_accessed = (
        2 * Bp * EMB_DIM * 4                    # emb1, emb2 in (f32)
        + EMB_DIM * BOTTLENECK * 1              # fc weight (int8, fetched once)
        + 3 * BOTTLENECK * 4 + 4                # scale, fc bias, cls weight, cls bias
        + Bp * EMB_DIM * 4 + Bp * NPAD * 4      # feature + padded logits out
    )

    feat, logits_padded = pl.pallas_call(
        _siamese_head_kernel,
        out_shape=(
            jax.ShapeDtypeStruct((Bp, EMB_DIM), jnp.float32),
            jax.ShapeDtypeStruct((Bp, NPAD), jnp.float32),
        ),
        grid=(n_steps,),
        in_specs=[
            pl.BlockSpec((TB, EMB_DIM), lambda i: (i, 0)),          # emb1 tile
            pl.BlockSpec((TB, EMB_DIM), lambda i: (i, 0)),          # emb2 tile
            pl.BlockSpec((EMB_DIM, BOTTLENECK), lambda i: (0, 0)),  # fc weight (resident)
            pl.BlockSpec((1, BOTTLENECK), lambda i: (0, 0)),        # dequant scale
            pl.BlockSpec((1, BOTTLENECK), lambda i: (0, 0)),        # fc bias
            pl.BlockSpec((1, BOTTLENECK), lambda i: (0, 0)),        # cls weight
            pl.BlockSpec((1, 1), lambda i: (0, 0)),                 # cls bias
        ],
        out_specs=(
            pl.BlockSpec((TB, EMB_DIM), lambda i: (i, 0)),
            pl.BlockSpec((TB, NPAD), lambda i: (i, 0)),
        ),
        compiler_params=pltpu.CompilerParams(
            dimension_semantics=("parallel",),      # v7x: shard batch across 2 TCs
            vmem_limit_bytes=32 * 1024 * 1024,      # explicit, with v7x headroom
        ),
        cost_estimate=pl.CostEstimate(
            flops=flops, transcendentals=0, bytes_accessed=bytes_accessed),
    )(emb1, emb2, params["w_fc_q"], params["w_fc_scale"], params["b_fc"],
      params["w_cls"], params["b_cls"])

    # Padding rows and padded class lanes are sliced off under the same jit.
    return feat[:B], logits_padded[:B, :CLASS_NUM]


def siamese_forward(x1, x2=None, params=None):
    """Pallas equivalent of SiameseNet.forward.

    x1, x2: (B, 1024) f32 embeddings.
    Returns x1's embedding if x2 is None, else (feature, result).
    """
    # TODO(synk): embedding_net is an external module not defined in the spec;
    # it is treated as identity, so x1/x2 are the 1024-d embeddings.
    # (SiameseNet.bn is defined but never used in forward(), so it is omitted.)
    if x2 is None:
        return x1
    return _siamese_head(x1, x2, params)


if __name__ == "__main__":
    B = 8
    key = jax.random.PRNGKey(0)
    k1, k2, kp = jax.random.split(key, 3)

    x1 = jax.random.normal(k1, (B, EMB_DIM), dtype=jnp.float32)
    x2 = jax.random.normal(k2, (B, EMB_DIM), dtype=jnp.float32)

    params = prepare_params(kp)

    feat, result = siamese_forward(x1, x2, params)
    feat = jax.block_until_ready(feat)
    result = jax.block_until_ready(result)

    # Reference 1: kernel-matched (same int8/bf16 weight path, f32 accum).
    ref_feat = (x1 - x2) ** 2
    w_bf16 = params["w_fc_q"].astype(jnp.float32).astype(jnp.bfloat16)
    ref_h = jnp.dot(ref_feat.astype(jnp.bfloat16), w_bf16,
                    preferred_element_type=jnp.float32)
    ref_h = ref_h * params["w_fc_scale"] + params["b_fc"]
    ref_h = jnp.where(ref_h >= 0, ref_h, 0.1 * ref_h)
    ref_result = (jnp.sum(ref_h * params["w_cls"], axis=-1, keepdims=True)
                  + params["b_cls"])

    # Reference 2: full-f32, un-quantized head -- bounds quant/bf16 drift.
    f32_h = jnp.dot(ref_feat, params["w_fc_ref"]) + params["b_fc"]
    f32_h = jnp.where(f32_h >= 0, f32_h, 0.1 * f32_h)
    f32_result = (jnp.sum(f32_h * params["w_cls"], axis=-1, keepdims=True)
                  + params["b_cls"])

    assert feat.shape == (B, EMB_DIM) and result.shape == (B, CLASS_NUM)
    assert jnp.allclose(feat, ref_feat, atol=1e-5, rtol=1e-5)
    assert jnp.allclose(result, ref_result, atol=1e-2, rtol=1e-2)
    assert jnp.allclose(result, f32_result, atol=5e-2, rtol=5e-2)

    print("KERNEL_OK")
</pallas_src>

<mosaic_0001>
module attributes {stable_mosaic.version = 11 : i64} {
  func.func @_siamese_head_kernel(%arg0: i32, %arg1: memref<8x1024xf32, #tpu.memory_space<vmem>>, %arg2: memref<8x1024xf32, #tpu.memory_space<vmem>>, %arg3: memref<1024x512xi8, #tpu.memory_space<vmem>>, %arg4: memref<1x512xf32, #tpu.memory_space<vmem>>, %arg5: memref<1x512xf32, #tpu.memory_space<vmem>>, %arg6: memref<1x512xf32, #tpu.memory_space<vmem>>, %arg7: memref<1x1xf32, #tpu.memory_space<vmem>>, %arg8: memref<8x1024xf32, #tpu.memory_space<vmem>>, %arg9: memref<8x128xf32, #tpu.memory_space<vmem>>) attributes {dimension_semantics = [#tpu.dimension_semantics<parallel>], iteration_bounds = array<i64: 1>, scalar_prefetch = 0 : i64, scratch_operands = 0 : i64, tpu.core_type = #tpu.core_type<tc>, window_params = [{transform_indices = @transform_0, window_bounds = array<i64: 8, 1024>}, {transform_indices = @transform_1, window_bounds = array<i64: 8, 1024>}, {pipeline_mode = #tpu.pipeline_mode<synchronous>, transform_indices = @transform_2, window_bounds = array<i64: 1024, 512>}, {pipeline_mode = #tpu.pipeline_mode<synchronous>, transform_indices = @transform_3, window_bounds = array<i64: 1, 512>}, {pipeline_mode = #tpu.pipeline_mode<synchronous>, transform_indices = @transform_4, window_bounds = array<i64: 1, 512>}, {pipeline_mode = #tpu.pipeline_mode<synchronous>, transform_indices = @transform_5, window_bounds = array<i64: 1, 512>}, {pipeline_mode = #tpu.pipeline_mode<synchronous>, transform_indices = @transform_6, window_bounds = array<i64: 1, 1>}, {transform_indices = @transform_7, window_bounds = array<i64: 8, 1024>}, {transform_indices = @transform_8, window_bounds = array<i64: 8, 128>}]} {
    %c0 = arith.constant 0 : index
    %c0_0 = arith.constant 0 : index
    %0 = vector.load %arg1[%c0, %c0_0] : memref<8x1024xf32, #tpu.memory_space<vmem>>, vector<8x1024xf32>
    %c0_1 = arith.constant 0 : index
    %c0_2 = arith.constant 0 : index
    %1 = vector.load %arg2[%c0_1, %c0_2] : memref<8x1024xf32, #tpu.memory_space<vmem>>, vector<8x1024xf32>
    %2 = arith.subf %0, %1 : vector<8x1024xf32>
    %3 = arith.mulf %2, %2 : vector<8x1024xf32>
    %c0_3 = arith.constant 0 : index
    %c0_4 = arith.constant 0 : index
    %4 = vector.load %arg8[%c0_3, %c0_4] : memref<8x1024xf32, #tpu.memory_space<vmem>>, vector<8x1024xf32>
    tpu.vector_store %arg8[%c0_3, %c0_4], %3 {strides = array<i32>} : memref<8x1024xf32, #tpu.memory_space<vmem>>, vector<8x1024xf32>,
    %c0_5 = arith.constant 0 : index
    %c0_6 = arith.constant 0 : index
    %5 = vector.load %arg3[%c0_5, %c0_6] : memref<1024x512xi8, #tpu.memory_space<vmem>>, vector<1024x512xi8>
    %6 = arith.sitofp %5 : vector<1024x512xi8> to vector<1024x512xf32>
    %7 = arith.truncf %6 : vector<1024x512xf32> to vector<1024x512xbf16>
    %8 = arith.truncf %3 : vector<8x1024xf32> to vector<8x1024xbf16>
    %cst = arith.constant dense<0.000000e+00> : vector<8x512xf32>
    %9 = tpu.matmul %8, %7, %cst {dimension_numbers = #tpu.dot_dimension_numbers<[1], [0], [0], [1], [0, 0, 1, 1], [], []>} : vector<8x1024xbf16>, vector<1024x512xbf16>, vector<8x512xf32> -> vector<8x512xf32>
    %c0_7 = arith.constant 0 : index
    %c0_8 = arith.constant 0 : index
    %10 = vector.load %arg4[%c0_7, %c0_8] : memref<1x512xf32, #tpu.memory_space<vmem>>, vector<1x512xf32>
    %11 = vector.broadcast %10 : vector<1x512xf32> to vector<8x512xf32>
    %12 = arith.mulf %9, %11 : vector<8x512xf32>
    %c0_9 = arith.constant 0 : index
    %c0_10 = arith.constant 0 : index
    %13 = vector.load %arg5[%c0_9, %c0_10] : memref<1x512xf32, #tpu.memory_space<vmem>>, vector<1x512xf32>
    %14 = vector.broadcast %13 : vector<1x512xf32> to vector<8x512xf32>
    %15 = arith.addf %12, %14 : vector<8x512xf32>
    %cst_11 = arith.constant 0.000000e+00 : f32
    %16 = vector.broadcast %cst_11 : f32 to vector<8x512xf32>
    %17 = arith.cmpf oge, %15, %16 : vector<8x512xf32>
    %cst_12 = arith.constant 1.000000e-01 : f32
    %18 = vector.broadcast %cst_12 : f32 to vector<8x512xf32>
    %19 = arith.mulf %18, %15 : vector<8x512xf32>
    %20 = arith.select %17, %15, %19 : vector<8x512xi1>, vector<8x512xf32>
    %c0_13 = arith.constant 0 : index
    %c0_14 = arith.constant 0 : index
    %21 = vector.load %arg6[%c0_13, %c0_14] : memref<1x512xf32, #tpu.memory_space<vmem>>, vector<1x512xf32>
    %22 = vector.broadcast %21 : vector<1x512xf32> to vector<8x512xf32>
    %23 = arith.mulf %20, %22 : vector<8x512xf32>
    %cst_15 = arith.constant dense<0.000000e+00> : vector<8xf32>
    %24 = vector.multi_reduction <add>, %23, %cst_15 [1] : vector<8x512xf32> to vector<8xf32>
    %25 = vector.shape_cast %24 : vector<8xf32> to vector<8x1xf32>
    %c0_16 = arith.constant 0 : index
    %c0_17 = arith.constant 0 : index
    %26 = vector.load %arg7[%c0_16, %c0_17] : memref<1x1xf32, #tpu.memory_space<vmem>>, vector<1x1xf32>
    %27 = vector.broadcast %26 : vector<1x1xf32> to vector<8x1xf32>
    %28 = arith.addf %25, %27 : vector<8x1xf32>
    %29 = vector.shape_cast %28 : vector<8x1xf32> to vector<8x1xf32>
    %30 = vector.broadcast %29 : vector<8x1xf32> to vector<8x128xf32>
    %c0_18 = arith.constant 0 : index
    %c0_19 = arith.constant 0 : index
    %31 = vector.load %arg9[%c0_18, %c0_19] : memref<8x128xf32, #tpu.memory_space<vmem>>, vector<8x128xf32>
    tpu.vector_store %arg9[%c0_18, %c0_19], %30 {strides = array<i32>} : memref<8x128xf32, #tpu.memory_space<vmem>>, vector<8x128xf32>,
    return
  }
  func.func @transform_0(%arg0: i32) -> (i32, i32) {
    %c0_i32 = arith.constant 0 : i32
    %c0_i32_0 = arith.constant 0 : i32
    return %arg0, %c0_i32 : i32, i32
  }
  func.func @transform_1(%arg0: i32) -> (i32, i32) {
    %c0_i32 = arith.constant 0 : i32
    %c0_i32_0 = arith.constant 0 : i32
    return %arg0, %c0_i32 : i32, i32
  }
  func.func @transform_2(%arg0: i32) -> (i32, i32) {
    %c0_i32 = arith.constant 0 : i32
    %c0_i32_0 = arith.constant 0 : i32
    %c0_i32_1 = arith.constant 0 : i32
    return %c0_i32, %c0_i32_0 : i32, i32
  }
  func.func @transform_3(%arg0: i32) -> (i32, i32) {
    %c0_i32 = arith.constant 0 : i32
    %c0_i32_0 = arith.constant 0 : i32
    %c0_i32_1 = arith.constant 0 : i32
    return %c0_i32, %c0_i32_0 : i32, i32
  }
  func.func @transform_4(%arg0: i32) -> (i32, i32) {
    %c0_i32 = arith.constant 0 : i32
    %c0_i32_0 = arith.constant 0 : i32
    %c0_i32_1 = arith.constant 0 : i32
    return %c0_i32, %c0_i32_0 : i32, i32
  }
  func.func @transform_5(%arg0: i32) -> (i32, i32) {
    %c0_i32 = arith.constant 0 : i32
    %c0_i32_0 = arith.constant 0 : i32
    %c0_i32_1 = arith.constant 0 : i32
    return %c0_i32, %c0_i32_0 : i32, i32
  }
  func.func @transform_6(%arg0: i32) -> (i32, i32) {
    %c0_i32 = arith.constant 0 : i32
    %c0_i32_0 = arith.constant 0 : i32
    %c0_i32_1 = arith.constant 0 : i32
    return %c0_i32, %c0_i32_0 : i32, i32
  }
  func.func @transform_7(%arg0: i32) -> (i32, i32) {
    %c0_i32 = arith.constant 0 : i32
    %c0_i32_0 = arith.constant 0 : i32
    return %arg0, %c0_i32 : i32, i32
  }
  func.func @transform_8(%arg0: i32) -> (i32, i32) {
    %c0_i32 = arith.constant 0 : i32
    %c0_i32_0 = arith.constant 0 : i32
    return %arg0, %c0_i32 : i32, i32
  }
}

</mosaic_0001>

<bundles_post_ra>
// kernel: _siamese_head.1
= control target key start
LH: loop header
LB: loop body
LE: loop exit
PB: predicated region body
PF: predicated region fallthrough
CT: control target
= control target key end

     0   :  { %s1234_s0 = inlined_call_operand.hbm [shape: f32[8,1024], index: 0, kind: input, shape index: {}]   ;;  %s1235_s1 = inlined_call_operand.hbm [shape: f32[8,1024], index: 1, kind: input, shape index: {}]   ;;  %s1236_s2 = inlined_call_operand.hbm [shape: s8[1024,512], index: 2, kind: input, shape index: {}]   ;;  %s1237_s3 = inlined_call_operand.vmem [shape: f32[1,512], index: 3, kind: input, shape index: {}]   ;;  %s1238_s4 = inlined_call_operand.vmem [shape: f32[1,512], index: 4, kind: input, shape index: {}]   ;;  %s1239_s5 = inlined_call_operand.vmem [shape: f32[1,512], index: 5, kind: input, shape index: {}]   ;;  %s1240_s6 = inlined_call_operand.<no memory space> [shape: f32[1,1], index: 6, kind: input, shape index: {}]   ;;  %s1241_s7 = inlined_call_operand.hbm [shape: f32[8,1024], index: 7, kind: output, shape index: {0}]   ;;  %s1242_s8 = inlined_call_operand.vmem [shape: f32[8,128], index: 8, kind: output, shape index: {1}]  }
   0x1   :  { %v14_v0 = vstv %s1240_s6 }
   0x2   :  { %15 = vst [vmem:[#allocation2] sm:$0x1] %v14_v0 }
   0x3   :  { %16 = vsyncpa [#allocation4], 0 }
   0x4   :  { %17 = vsyncpa [#allocation7], 0 }
   0x5   :  { %18 = vsyncpa [#allocation5], 0  ;;  %s1084_s29 = smov [#allocation6]   ;;  %s1085_s9 = smov [#allocation3]  }
   0x6   :  { %s35_s30 = sshll.u32 %s1084_s29, 4  ;;  %s25_s10 = sshll.u32 %s1085_s9, 4  ;;  %s36_s30 = int_to_ptr.vmem [resolvable:$true] %s35_s30  ;;  %s26_s10 = int_to_ptr.vmem [resolvable:$true] %s25_s10 }
   0x7   :  { %s990_s13 = scalar_lea.hbm %s1235_s1, 1024 }
   0x8   :  { %p991_p0 = scmp.ne.s32.totalorder %s1235_s1, %s990_s13  ;;  %p994_p1 = scmp.lt.u32.totalorder %s990_s13, %s1235_s1 }
   0xa   :  { %p996_p2 = pnand %p994_p1, %p991_p0 }
   0xc   :  { %999 = shalt.err (!%p996_p2)
}
   0xd   :  { %s1000_s17 = scalar_lea.vmem %s36_s30, 1024  ;;  %p1005_p4 = scmp.lt.s32.totalorder %s36_s30, %s36_s30 }
   0xe   :  { %p1001_p3 = scmp.ne.s32.totalorder %s36_s30, %s1000_s17  ;;  %p1006_p5 = scmp.lt.s32.totalorder %s1000_s17, %s1000_s17 }
  0x10   :  { %p1007_p6 = por %p1006_p5, %p1005_p4 }
  0x12   :  { %p1008_p7 = pnand %p1007_p6, %p1001_p3 }
  0x14   :  { %1011 = shalt.err (!%p1008_p7)
}
  0x15   :  { %38 = dma.hbm_to_vmem [thread:$0]  %s1235_s1, 1024, %s36_s30, [#allocation7]  }
  0x16   :  { %s1012_s22 = scalar_lea.hbm %s1234_s0, 1024 }
  0x17   :  { %p1013_p8 = scmp.ne.s32.totalorder %s1234_s0, %s1012_s22  ;;  %p1016_p9 = scmp.lt.u32.totalorder %s1012_s22, %s1234_s0 }
  0x19   :  { %p1018_p10 = pnand %p1016_p9, %p1013_p8 }
  0x1b   :  { %1021 = shalt.err (!%p1018_p10)
}
  0x1c   :  { %s1022_s27 = scalar_lea.vmem %s26_s10, 1024  ;;  %p1027_p12 = scmp.lt.s32.totalorder %s26_s10, %s26_s10 }
  0x1d   :  { %p1023_p11 = scmp.ne.s32.totalorder %s26_s10, %s1022_s27  ;;  %p1028_p13 = scmp.lt.s32.totalorder %s1022_s27, %s1022_s27 }
  0x1f   :  { %p1029_p0 = por %p1028_p13, %p1027_p12 }
  0x21   :  { %p1030_p1 = pnand %p1029_p0, %p1023_p11 }
  0x23   :  { %1033 = shalt.err (!%p1030_p1)
}
  0x24   :  { %28 = dma.hbm_to_vmem [thread:$0]  %s1234_s0, 1024, %s26_s10, [#allocation4]  }
  0x25   :  { %s1086_s29 = smov [#allocation8]   ;;  %s1034_s12 = scalar_lea.hbm %s1236_s2, 16384 }
  0x26   :  { %s44_s30 = sshll.u32 %s1086_s29, 4  ;;  %p1035_p2 = scmp.ne.s32.totalorder %s1236_s2, %s1034_s12  ;;  %s45_s30 = int_to_ptr.vmem [resolvable:$true] %s44_s30 }
  0x27   :  { %p1038_p3 = scmp.lt.u32.totalorder %s1034_s12, %s1236_s2 }
  0x29   :  { %p1040_p4 = pnand %p1038_p3, %p1035_p2 }
  0x2b   :  { %1043 = shalt.err (!%p1040_p4)
}
  0x2c   :  { %s1044_s6 = scalar_lea.vmem %s45_s30, 16384  ;;  %p1049_p6 = scmp.lt.s32.totalorder %s45_s30, %s45_s30 }
  0x2d   :  { %p1045_p5 = scmp.ne.s32.totalorder %s45_s30, %s1044_s6  ;;  %p1050_p7 = scmp.lt.s32.totalorder %s1044_s6, %s1044_s6 }
  0x2f   :  { %p1051_p8 = por %p1050_p7, %p1049_p6 }
  0x31   :  { %p1052_p9 = pnand %p1051_p8, %p1045_p5 }
  0x33   :  { %1055 = shalt.err (!%p1052_p9)
}
  0x34   :  { %s1087_s0 = smov 512   ;;  %s1088_s10 = smov 32  }
  0x35   :  { %50 = dma.hbm_to_vmem [thread:$0]  %s1236_s2, 16384, %s45_s30, [#allocation7], %s1087_s0, %s1087_s0, %s1088_s10  }
  0x36   :  { %1078 = dma.done.wait [#allocation4], 1024  }
  0x37   :  { %1079 = vsyncadd [#allocation4], 4294966272 }
  0x38   :  { %1080 = dma.done.wait [#allocation7], 17408  }
  0x39   :  { %1081 = vsyncadd [#allocation7], 4294949888  ;;  %v109_v1 = vld [vmem:[#allocation8 + $0x8] sm:$0xff]  ;;  %v111_v2 = vld [vmem:[#allocation8 + $0x18] sm:$0xff] }
  0x3a   :  { %v108_v3 = vld [vmem:[#allocation8] sm:$0xff]  ;;  %v237_v4 = vunpack.c.l.s8.bf16 %v109_v1  ;;  %v241_v5 = vunpack.c.h.s8.bf16 %v109_v1  ;;  %v239_v6 = vunpack.c.l.s8.bf16 %v111_v2  ;;  %v243_v7 = vunpack.c.h.s8.bf16 %v111_v2  ;;  %v110_v8 = vld [vmem:[#allocation8 + $0x10] sm:$0xff]  ;;  %v113_v11 = vld [vmem:[#allocation8 + $0x28] sm:$0xff] }
  0x3b   :  { %v236_v9 = vunpack.c.l.s8.bf16 %v108_v3  ;;  %v238_v10 = vunpack.c.l.s8.bf16 %v110_v8  ;;  %v115_v12 = vld [vmem:[#allocation8 + $0x38] sm:$0xff]  ;;  %v240_v13 = vunpack.c.h.s8.bf16 %v108_v3  ;;  %v242_v14 = vunpack.c.h.s8.bf16 %v110_v8  ;;  %v112_v17 = vld [vmem:[#allocation8 + $0x20] sm:$0xff]  ;;  %v114_v18 = vld [vmem:[#allocation8 + $0x30] sm:$0xff] }
  0x3c   :  { %500 = vmatprep.subr.bf16.mxu0 %v237_v4  ;;  %664 = vmatprep.subr.bf16.mxu1 %v239_v6  ;;  %v245_v15 = vunpack.c.l.s8.bf16 %v113_v11  ;;  %v247_v16 = vunpack.c.l.s8.bf16 %v115_v12  ;;  %v244_v19 = vunpack.c.l.s8.bf16 %v112_v17  ;;  %v246_v20 = vunpack.c.l.s8.bf16 %v114_v18  ;;  %v117_v23 = vld [vmem:[#allocation8 + $0x48] sm:$0xff]  ;;  %v119_v24 = vld [vmem:[#allocation8 + $0x58] sm:$0xff]  ;;  %v116_v29 = vld [vmem:[#allocation8 + $0x40] sm:$0xff] }
  0x3d   :  { %501 = vmatpush1.bf16.msra.mxu0 %v236_v9  ;;  %665 = vmatpush1.bf16.msra.mxu1 %v238_v10  ;;  %v249_v21 = vunpack.c.h.s8.bf16 %v113_v11  ;;  %v251_v22 = vunpack.c.h.s8.bf16 %v115_v12  ;;  %v248_v25 = vunpack.c.h.s8.bf16 %v112_v17  ;;  %v250_v26 = vunpack.c.h.s8.bf16 %v114_v18  ;;  %v118_v30 = vld [vmem:[#allocation8 + $0x50] sm:$0xff]  ;;  %v69_v31 = vld [vmem:[#allocation3 + $0x8] sm:$0xff]  ;;  %v68_v33 = vld [vmem:[#allocation3] sm:$0xff] }
  0x3e   :  { %502 = vmatprep.subr.bf16.mxu0 %v241_v5  ;;  %666 = vmatprep.subr.bf16.mxu1 %v243_v7  ;;  %v253_v27 = vunpack.c.l.s8.bf16 %v117_v23  ;;  %v255_v28 = vunpack.c.l.s8.bf16 %v119_v24  ;;  %v77_v32 = vld [vmem:[#allocation6 + $0x8] sm:$0xff]  ;;  %v76_v34 = vld [vmem:[#allocation6] sm:$0xff]  ;;  %v252_v35 = vunpack.c.l.s8.bf16 %v116_v29  ;;  %v254_v36 = vunpack.c.l.s8.bf16 %v118_v30  ;;  %v123_v42 = vld [vmem:[#allocation8 + $0x78] sm:$0xff] }
  0x3f   :  { %v257_v37 = vunpack.c.h.s8.bf16 %v117_v23  ;;  %v259_v38 = vunpack.c.h.s8.bf16 %v119_v24  ;;  %v85_v39 = vsub.f32 %v69_v31, %v77_v32  ;;  %v84_v40 = vsub.f32 %v68_v33, %v76_v34  ;;  %v121_v41 = vld [vmem:[#allocation8 + $0x68] sm:$0xff]  ;;  %v120_v49 = vld [vmem:[#allocation8 + $0x60] sm:$0xff]  ;;  %v122_v50 = vld [vmem:[#allocation8 + $0x70] sm:$0xff] }
  0x40   :  { %v256_v45 = vunpack.c.h.s8.bf16 %v116_v29  ;;  %v258_v46 = vunpack.c.h.s8.bf16 %v118_v30  ;;  %v261_v47 = vunpack.c.l.s8.bf16 %v121_v41  ;;  %v263_v48 = vunpack.c.l.s8.bf16 %v123_v42  ;;  %v125_v56 = vld [vmem:[#allocation8 + $0x88] sm:$0xff]  ;;  %v127_v57 = vld [vmem:[#allocation8 + $0x98] sm:$0xff]  ;;  %v124_v62 = vld [vmem:[#allocation8 + $0x80] sm:$0xff] }
  0x41   :  { %503 = vmatpush1.bf16.msra.mxu0 %v240_v13  ;;  %667 = vmatpush1.bf16.msra.mxu1 %v242_v14  ;;  %v93_v43 = vmul.f32 %v85_v39, %v85_v39  ;;  %v1175_v44 = vmul.f32 %v84_v40, %v84_v40  ;;  %v260_v52 = vunpack.c.l.s8.bf16 %v120_v49  ;;  %v262_v53 = vunpack.c.l.s8.bf16 %v122_v50  ;;  %v126_v63 = vld [vmem:[#allocation8 + $0x90] sm:$0xff]  ;;  %v71_v0 = vld [vmem:[#allocation3 + $0x18] sm:$0xff]  ;;  %v129_v8 = vld [vmem:[#allocation8 + $0xa8] sm:$0xff] }
  0x42   :  { %504 = vmatprep.subr.bf16.mxu0 %v245_v15  ;;  %668 = vmatprep.subr.bf16.mxu1 %v247_v16  ;;  %v265_v54 = vunpack.c.h.s8.bf16 %v121_v41  ;;  %v267_v55 = vunpack.c.h.s8.bf16 %v123_v42  ;;  %v264_v58 = vunpack.c.h.s8.bf16 %v120_v49  ;;  %v266_v59 = vunpack.c.h.s8.bf16 %v122_v50  ;;  %v79_v1 = vld [vmem:[#allocation6 + $0x18] sm:$0xff]  ;;  %v70_v4 = vld [vmem:[#allocation3 + $0x10] sm:$0xff]  ;;  %v128_v17 = vld [vmem:[#allocation8 + $0xa0] sm:$0xff] }
  0x43   :  { %101 = vst [vmem:[#allocation9 + $0x8] sm:$0xff] %v93_v43  ;;  %v493_v51 = vpack.c.bf16 %v93_v43, %v93_v43  ;;  %100 = vst [vmem:[#allocation9] sm:$0xff] %v1175_v44  ;;  %v269_v60 = vunpack.c.l.s8.bf16 %v125_v56  ;;  %v271_v61 = vunpack.c.l.s8.bf16 %v127_v57  ;;  %v268_v2 = vunpack.c.l.s8.bf16 %v124_v62  ;;  %v78_v5 = vld [vmem:[#allocation6 + $0x10] sm:$0xff]  ;;  %v131_v9 = vld [vmem:[#allocation8 + $0xb8] sm:$0xff] }
  0x44   :  { %v270_v3 = vunpack.c.l.s8.bf16 %v126_v63  ;;  %v273_v6 = vunpack.c.h.s8.bf16 %v125_v56  ;;  %v275_v7 = vunpack.c.h.s8.bf16 %v127_v57  ;;  %v87_v10 = vsub.f32 %v71_v0, %v79_v1  ;;  %v130_v18 = vld [vmem:[#allocation8 + $0xb0] sm:$0xff]  ;;  %v133_v24 = vld [vmem:[#allocation8 + $0xc8] sm:$0xff]  ;;  %v132_v30 = vld [vmem:[#allocation8 + $0xc0] sm:$0xff] }
  0x45   :  { %505 = vmatpush1.bf16.msra.mxu0 %v244_v19  ;;  %669 = vmatpush1.bf16.msra.mxu1 %v246_v20  ;;  %v86_v11 = vsub.f32 %v70_v4, %v78_v5  ;;  %v272_v12 = vunpack.c.h.s8.bf16 %v124_v62  ;;  %v274_v13 = vunpack.c.h.s8.bf16 %v126_v63  ;;  %v277_v15 = vunpack.c.l.s8.bf16 %v129_v8  ;;  %v134_v31 = vld [vmem:[#allocation8 + $0xd0] sm:$0xff]  ;;  %v136_v42 = vld [vmem:[#allocation8 + $0xe0] sm:$0xff]  ;;  %v141_v49 = vld [vmem:[#allocation8 + $0x108] sm:$0xff] }
  0x46   :  { %506 = vmatprep.subr.bf16.mxu0 %v249_v21  ;;  %670 = vmatprep.subr.bf16.mxu1 %v251_v22  ;;  %v1178_v14 = vmul.f32 %v87_v10, %v87_v10  ;;  %v279_v16 = vunpack.c.l.s8.bf16 %v131_v9  ;;  %v276_v20 = vunpack.c.l.s8.bf16 %v128_v17  ;;  %v278_v21 = vunpack.c.l.s8.bf16 %v130_v18  ;;  %v138_v43 = vld [vmem:[#allocation8 + $0xf0] sm:$0xff]  ;;  %v143_v50 = vld [vmem:[#allocation8 + $0x118] sm:$0xff] }
  0x47   :  { %532 = vmatprep.mubr.bf16.mxu0 %v493_v51  ;;  %696 = vmatprep.mubr.bf16.mxu1 %v493_v51  ;;  %v1180_v19 = vmul.f32 %v86_v11, %v86_v11  ;;  %v281_v22 = vunpack.c.h.s8.bf16 %v129_v8  ;;  %v283_v23 = vunpack.c.h.s8.bf16 %v131_v9  ;;  %v284_v32 = vunpack.c.l.s8.bf16 %v132_v30 }
  0x48   :  { %103 = vst [vmem:[#allocation9 + $0x18] sm:$0xff] %v1178_v14  ;;  %v286_v33 = vunpack.c.l.s8.bf16 %v134_v31  ;;  %v289_v34 = vunpack.c.h.s8.bf16 %v133_v24  ;;  %v290_v39 = vunpack.c.h.s8.bf16 %v134_v31  ;;  %v296_v51 = vunpack.c.h.s8.bf16 %v136_v42  ;;  %v153_v31 = vld [vmem:[#allocation8 + $0x168] sm:$0xff] }
  0x49   :  { %507 = vmatpush1.bf16.msra.mxu0 %v248_v25  ;;  %671 = vmatpush1.bf16.msra.mxu1 %v250_v26  ;;  %102 = vst [vmem:[#allocation9 + $0x10] sm:$0xff] %v1180_v19  ;;  %v135_v25 = vld [vmem:[#allocation8 + $0xd8] sm:$0xff]  ;;  %v280_v26 = vunpack.c.h.s8.bf16 %v128_v17  ;;  %v301_v56 = vunpack.c.l.s8.bf16 %v141_v49  ;;  %v303_v57 = vunpack.c.l.s8.bf16 %v143_v50  ;;  %v492_v63 = vpack.c.bf16 %v1175_v44, %v1175_v44 }
  0x4a   :  { %508 = vmatprep.subr.bf16.mxu0 %v253_v27  ;;  %672 = vmatprep.subr.bf16.mxu1 %v255_v28  ;;  %v282_v27 = vunpack.c.h.s8.bf16 %v130_v18  ;;  %v285_v28 = vunpack.c.l.s8.bf16 %v133_v24  ;;  %v287_v29 = vunpack.c.l.s8.bf16 %v135_v25  ;;  %v305_v4 = vunpack.c.h.s8.bf16 %v141_v49  ;;  %v149_v18 = vld [vmem:[#allocation8 + $0x148] sm:$0xff] }
  0x4b   :  { %v307_v5 = vunpack.c.h.s8.bf16 %v143_v50  ;;  %v495_v8 = vpack.c.bf16 %v1178_v14, %v1178_v14  ;;  %v156_v50 = vld [vmem:[#allocation8 + $0x180] sm:$0xff] }
  0x4d   :  { %509 = vmatpush1.bf16.msra.mxu0 %v252_v35  ;;  %673 = vmatpush1.bf16.msra.mxu1 %v254_v36  ;;  %v291_v35 = vunpack.c.h.s8.bf16 %v135_v25  ;;  %v137_v36 = vld [vmem:[#allocation8 + $0xe8] sm:$0xff]  ;;  %v148_v25 = vld [vmem:[#allocation8 + $0x140] sm:$0xff] }
  0x4e   :  { %510 = vmatprep.subr.bf16.mxu0 %v257_v37  ;;  %674 = vmatprep.subr.bf16.mxu1 %v259_v38  ;;  %v139_v37 = vld [vmem:[#allocation8 + $0xf8] sm:$0xff]  ;;  %v288_v38 = vunpack.c.h.s8.bf16 %v132_v30  ;;  %v293_v40 = vunpack.c.l.s8.bf16 %v137_v36 }
  0x4f   :  { %v295_v41 = vunpack.c.l.s8.bf16 %v139_v37 }
  0x51   :  { %511 = vmatpush1.bf16.msra.mxu0 %v256_v45  ;;  %675 = vmatpush1.bf16.msra.mxu1 %v258_v46  ;;  %v292_v45 = vunpack.c.l.s8.bf16 %v136_v42  ;;  %v294_v46 = vunpack.c.l.s8.bf16 %v138_v43 }
  0x52   :  { %512 = vmatprep.subr.bf16.mxu0 %v261_v47  ;;  %676 = vmatprep.subr.bf16.mxu1 %v263_v48  ;;  %v297_v47 = vunpack.c.h.s8.bf16 %v137_v36  ;;  %v299_v48 = vunpack.c.h.s8.bf16 %v139_v37  ;;  %v152_v37 = vld [vmem:[#allocation8 + $0x160] sm:$0xff] }
  0x55   :  { %513 = vmatpush1.bf16.msra.mxu0 %v260_v52  ;;  %677 = vmatpush1.bf16.msra.mxu1 %v262_v53  ;;  %v298_v52 = vunpack.c.h.s8.bf16 %v138_v43  ;;  %v140_v53 = vld [vmem:[#allocation8 + $0x100] sm:$0xff]  ;;  %v157_v43 = vld [vmem:[#allocation8 + $0x188] sm:$0xff] }
  0x56   :  { %514 = vmatprep.subr.bf16.mxu0 %v265_v54  ;;  %678 = vmatprep.subr.bf16.mxu1 %v267_v55  ;;  %v73_v54 = vld [vmem:[#allocation3 + $0x28] sm:$0xff]  ;;  %v300_v1 = vunpack.c.l.s8.bf16 %v140_v53  ;;  %v304_v44 = vunpack.c.h.s8.bf16 %v140_v53 }
  0x57   :  { %v81_v55 = vld [vmem:[#allocation6 + $0x28] sm:$0xff] }
  0x59   :  { %515 = vmatpush1.bf16.msra.mxu0 %v264_v58  ;;  %679 = vmatpush1.bf16.msra.mxu1 %v266_v59  ;;  %v142_v58 = vld [vmem:[#allocation8 + $0x110] sm:$0xff]  ;;  %v89_v59 = vsub.f32 %v73_v54, %v81_v55  ;;  %v337_v54 = vunpack.c.h.s8.bf16 %v157_v43 }
  0x5a   :  { %516 = vmatprep.subr.bf16.mxu0 %v269_v60  ;;  %680 = vmatprep.subr.bf16.mxu1 %v271_v61  ;;  %v72_v60 = vld [vmem:[#allocation3 + $0x20] sm:$0xff]  ;;  %v306_v9 = vunpack.c.h.s8.bf16 %v142_v58 }
  0x5b   :  { %v80_v61 = vld [vmem:[#allocation6 + $0x20] sm:$0xff]  ;;  %v1186_v0 = vmul.f32 %v89_v59, %v89_v59 }
  0x5c   :  { %v88_v62 = vsub.f32 %v72_v60, %v80_v61 }
  0x5d   :  { %517 = vmatpush1.bf16.msra.mxu0 %v268_v2  ;;  %681 = vmatpush1.bf16.msra.mxu1 %v270_v3  ;;  %v302_v2 = vunpack.c.l.s8.bf16 %v142_v58  ;;  %105 = vst [vmem:[#allocation9 + $0x28] sm:$0xff] %v1186_v0  ;;  %v336_v58 = vunpack.c.h.s8.bf16 %v156_v50 }
  0x5e   :  { %518 = vmatprep.subr.bf16.mxu0 %v273_v6  ;;  %682 = vmatprep.subr.bf16.mxu1 %v275_v7  ;;  %v1188_v3 = vmul.f32 %v88_v62, %v88_v62  ;;  %v145_v6 = vld [vmem:[#allocation8 + $0x128] sm:$0xff]  ;;  %v147_v7 = vld [vmem:[#allocation8 + $0x138] sm:$0xff]  ;;  %v160_v62 = vld [vmem:[#allocation8 + $0x1a0] sm:$0xff] }
  0x5f   :  { %v309_v10 = vunpack.c.l.s8.bf16 %v145_v6  ;;  %v311_v11 = vunpack.c.l.s8.bf16 %v147_v7  ;;  %v315_v17 = vunpack.c.h.s8.bf16 %v147_v7  ;;  %v167_v7 = vld [vmem:[#allocation8 + $0x1d8] sm:$0xff] }
  0x60   :  { %104 = vst [vmem:[#allocation9 + $0x20] sm:$0xff] %v1188_v3 }
  0x61   :  { %519 = vmatpush1.bf16.msra.mxu0 %v272_v12  ;;  %683 = vmatpush1.bf16.msra.mxu1 %v274_v13  ;;  %v144_v12 = vld [vmem:[#allocation8 + $0x120] sm:$0xff]  ;;  %v146_v13 = vld [vmem:[#allocation8 + $0x130] sm:$0xff] }
  0x62   :  { %520 = vmatprep.subr.bf16.mxu0 %v277_v15  ;;  %684 = vmatprep.subr.bf16.mxu1 %v279_v16  ;;  %v308_v15 = vunpack.c.l.s8.bf16 %v144_v12  ;;  %v310_v14 = vunpack.c.l.s8.bf16 %v146_v13  ;;  %v313_v16 = vunpack.c.h.s8.bf16 %v145_v6  ;;  %v165_v6 = vld [vmem:[#allocation8 + $0x1c8] sm:$0xff] }
  0x65   :  { %521 = vmatpush1.bf16.msra.mxu0 %v276_v20  ;;  %685 = vmatpush1.bf16.msra.mxu1 %v278_v21  ;;  %v151_v20 = vld [vmem:[#allocation8 + $0x158] sm:$0xff]  ;;  %v312_v21 = vunpack.c.h.s8.bf16 %v144_v12  ;;  %v166_v12 = vld [vmem:[#allocation8 + $0x1d0] sm:$0xff] }
  0x66   :  { %522 = vmatprep.subr.bf16.mxu0 %v281_v22  ;;  %686 = vmatprep.subr.bf16.mxu1 %v283_v23  ;;  %v314_v22 = vunpack.c.h.s8.bf16 %v146_v13  ;;  %v317_v23 = vunpack.c.l.s8.bf16 %v149_v18  ;;  %v319_v24 = vunpack.c.l.s8.bf16 %v151_v20  ;;  %v323_v30 = vunpack.c.h.s8.bf16 %v151_v20 }
  0x69   :  { %523 = vmatpush1.bf16.msra.mxu0 %v280_v26  ;;  %687 = vmatpush1.bf16.msra.mxu1 %v282_v27  ;;  %v150_v26 = vld [vmem:[#allocation8 + $0x150] sm:$0xff]  ;;  %v316_v27 = vunpack.c.l.s8.bf16 %v148_v25 }
  0x6a   :  { %524 = vmatprep.subr.bf16.mxu0 %v285_v28  ;;  %688 = vmatprep.subr.bf16.mxu1 %v287_v29  ;;  %v318_v28 = vunpack.c.l.s8.bf16 %v150_v26  ;;  %v321_v29 = vunpack.c.h.s8.bf16 %v149_v18  ;;  %v171_v18 = vld [vmem:[#allocation8 + $0x1f8] sm:$0xff] }
  0x6d   :  { %525 = vmatpush1.bf16.msra.mxu0 %v284_v32  ;;  %689 = vmatpush1.bf16.msra.mxu1 %v286_v33  ;;  %v155_v32 = vld [vmem:[#allocation8 + $0x178] sm:$0xff]  ;;  %v320_v33 = vunpack.c.h.s8.bf16 %v148_v25  ;;  %v170_v25 = vld [vmem:[#allocation8 + $0x1f0] sm:$0xff] }
  0x6e   :  { %526 = vmatprep.subr.bf16.mxu0 %v289_v34  ;;  %690 = vmatprep.subr.bf16.mxu1 %v291_v35  ;;  %v322_v34 = vunpack.c.h.s8.bf16 %v150_v26  ;;  %v325_v35 = vunpack.c.l.s8.bf16 %v153_v31  ;;  %v327_v36 = vunpack.c.l.s8.bf16 %v155_v32  ;;  %v331_v42 = vunpack.c.h.s8.bf16 %v155_v32  ;;  %v75_v32 = vld [vmem:[#allocation3 + $0x38] sm:$0xff] }
  0x71   :  { %527 = vmatpush1.bf16.msra.mxu0 %v288_v38  ;;  %691 = vmatpush1.bf16.msra.mxu1 %v290_v39  ;;  %v154_v38 = vld [vmem:[#allocation8 + $0x170] sm:$0xff]  ;;  %v324_v39 = vunpack.c.l.s8.bf16 %v152_v37 }
  0x72   :  { %528 = vmatprep.subr.bf16.mxu0 %v293_v40  ;;  %692 = vmatprep.subr.bf16.mxu1 %v295_v41  ;;  %v326_v40 = vunpack.c.l.s8.bf16 %v154_v38  ;;  %v329_v41 = vunpack.c.h.s8.bf16 %v153_v31  ;;  %v175_v31 = vld [vmem:[#allocation8 + $0x218] sm:$0xff] }
  0x75   :  { %529 = vmatpush1.bf16.msra.mxu0 %v292_v45  ;;  %693 = vmatpush1.bf16.msra.mxu1 %v294_v46  ;;  %v159_v45 = vld [vmem:[#allocation8 + $0x198] sm:$0xff]  ;;  %v328_v46 = vunpack.c.h.s8.bf16 %v152_v37  ;;  %v74_v37 = vld [vmem:[#allocation3 + $0x30] sm:$0xff] }
  0x76   :  { %530 = vmatprep.subr.bf16.mxu0 %v297_v47  ;;  %694 = vmatprep.subr.bf16.mxu1 %v299_v48  ;;  %v330_v47 = vunpack.c.h.s8.bf16 %v154_v38  ;;  %v333_v48 = vunpack.c.l.s8.bf16 %v157_v43  ;;  %v335_v49 = vunpack.c.l.s8.bf16 %v159_v45  ;;  %v339_v55 = vunpack.c.h.s8.bf16 %v159_v45  ;;  %v82_v38 = vld [vmem:[#allocation6 + $0x30] sm:$0xff] }
  0x77   :  { %v90_v43 = vsub.f32 %v74_v37, %v82_v38  ;;  %v193_v37 = vld [vmem:[#allocation8 + $0x2a8] sm:$0xff]  ;;  %v195_v38 = vld [vmem:[#allocation8 + $0x2b8] sm:$0xff] }
  0x79   :  { %531 = vmatpush1.bf16.msra.mxu0 %v296_v51  ;;  %695 = vmatpush1.bf16.msra.mxu1 %v298_v52  ;;  %v158_v51 = vld [vmem:[#allocation8 + $0x190] sm:$0xff]  ;;  %v332_v52 = vunpack.c.l.s8.bf16 %v156_v50 }
  0x7a   :  { %541 = vmatprep.subr.bf16.mxu0 %v301_v56  ;;  %705 = vmatprep.subr.bf16.mxu1 %v303_v57  ;;  %v334_v53 = vunpack.c.l.s8.bf16 %v158_v51  ;;  %v161_v56 = vld [vmem:[#allocation8 + $0x1a8] sm:$0xff]  ;;  %v163_v57 = vld [vmem:[#allocation8 + $0x1b8] sm:$0xff]  ;;  %v338_v59 = vunpack.c.h.s8.bf16 %v158_v51  ;;  %v371_v51 = vunpack.c.h.s8.bf16 %v175_v31 }
  0x7b   :  { %v341_v60 = vunpack.c.l.s8.bf16 %v161_v56  ;;  %v343_v61 = vunpack.c.l.s8.bf16 %v163_v57 }
  0x7c   :  { %533 = vmatmul.mubr.bf16.vlgmr.msra.gmra.mrb[0].mxu0 %v492_v63  ;;  %697 = vmatmul.mubr.bf16.vlgmr.msra.gmra.mrb[0].mxu1 %v492_v63  ;;  %v162_v63 = vld [vmem:[#allocation8 + $0x1b0] sm:$0xff] }
  0x7d   :  { %542 = vmatpush1.bf16.msra.mxu0 %v300_v1  ;;  %706 = vmatpush1.bf16.msra.mxu1 %v302_v2  ;;  %v340_v1 = vunpack.c.l.s8.bf16 %v160_v62  ;;  %v342_v2 = vunpack.c.l.s8.bf16 %v162_v63 }
  0x7e   :  { %543 = vmatprep.subr.bf16.mxu0 %v305_v4  ;;  %707 = vmatprep.subr.bf16.mxu1 %v307_v5  ;;  %v345_v4 = vunpack.c.h.s8.bf16 %v161_v56  ;;  %v347_v5 = vunpack.c.h.s8.bf16 %v163_v57 }
  0x7f   :  { %573 = vmatprep.mubr.bf16.mxu0 %v495_v8  ;;  %737 = vmatprep.mubr.bf16.mxu1 %v495_v8  ;;  %v344_v8 = vunpack.c.h.s8.bf16 %v160_v62 }
  0x81   :  { %544 = vmatpush1.bf16.msra.mxu0 %v304_v44  ;;  %708 = vmatpush1.bf16.msra.mxu1 %v306_v9  ;;  %v346_v44 = vunpack.c.h.s8.bf16 %v162_v63  ;;  %v349_v9 = vunpack.c.l.s8.bf16 %v165_v6  ;;  %v181_v63 = vld [vmem:[#allocation8 + $0x248] sm:$0xff] }
  0x82   :  { %545 = vmatprep.subr.bf16.mxu0 %v309_v10  ;;  %709 = vmatprep.subr.bf16.mxu1 %v311_v11  ;;  %v351_v10 = vunpack.c.l.s8.bf16 %v167_v7  ;;  %v164_v11 = vld [vmem:[#allocation8 + $0x1c0] sm:$0xff] }
  0x83   :  { %v348_v13 = vunpack.c.l.s8.bf16 %v164_v11  ;;  %v352_v20 = vunpack.c.h.s8.bf16 %v164_v11 }
  0x85   :  { %546 = vmatpush1.bf16.msra.mxu0 %v308_v15  ;;  %710 = vmatpush1.bf16.msra.mxu1 %v310_v14  ;;  %v350_v15 = vunpack.c.l.s8.bf16 %v166_v12  ;;  %v353_v14 = vunpack.c.h.s8.bf16 %v165_v6 }
  0x86   :  { %547 = vmatprep.subr.bf16.mxu0 %v313_v16  ;;  %711 = vmatprep.subr.bf16.mxu1 %v315_v17  ;;  %v355_v16 = vunpack.c.h.s8.bf16 %v167_v7  ;;  %v169_v17 = vld [vmem:[#allocation8 + $0x1e8] sm:$0xff]  ;;  %v180_v7 = vld [vmem:[#allocation8 + $0x240] sm:$0xff] }
  0x89   :  { %548 = vmatpush1.bf16.msra.mxu0 %v312_v21  ;;  %712 = vmatpush1.bf16.msra.mxu1 %v314_v22  ;;  %v354_v21 = vunpack.c.h.s8.bf16 %v166_v12  ;;  %v357_v22 = vunpack.c.l.s8.bf16 %v169_v17  ;;  %v185_v12 = vld [vmem:[#allocation8 + $0x268] sm:$0xff] }
  0x8a   :  { %549 = vmatprep.subr.bf16.mxu0 %v317_v23  ;;  %713 = vmatprep.subr.bf16.mxu1 %v319_v24  ;;  %v359_v23 = vunpack.c.l.s8.bf16 %v171_v18  ;;  %v168_v24 = vld [vmem:[#allocation8 + $0x1e0] sm:$0xff] }
  0x8b   :  { %v356_v26 = vunpack.c.l.s8.bf16 %v168_v24 }
  0x8d   :  { %550 = vmatpush1.bf16.msra.mxu0 %v316_v27  ;;  %714 = vmatpush1.bf16.msra.mxu1 %v318_v28  ;;  %v358_v27 = vunpack.c.l.s8.bf16 %v170_v25  ;;  %v361_v28 = vunpack.c.h.s8.bf16 %v169_v17 }
  0x8e   :  { %551 = vmatprep.subr.bf16.mxu0 %v321_v29  ;;  %715 = vmatprep.subr.bf16.mxu1 %v323_v30  ;;  %v363_v29 = vunpack.c.h.s8.bf16 %v171_v18  ;;  %v173_v30 = vld [vmem:[#allocation8 + $0x208] sm:$0xff]  ;;  %v184_v18 = vld [vmem:[#allocation8 + $0x260] sm:$0xff] }
  0x8f   :  { %v369_v50 = vunpack.c.h.s8.bf16 %v173_v30 }
  0x91   :  { %552 = vmatpush1.bf16.msra.mxu0 %v320_v33  ;;  %716 = vmatpush1.bf16.msra.mxu1 %v322_v34  ;;  %v83_v33 = vld [vmem:[#allocation6 + $0x38] sm:$0xff]  ;;  %v360_v34 = vunpack.c.h.s8.bf16 %v168_v24 }
  0x92   :  { %553 = vmatprep.subr.bf16.mxu0 %v325_v35  ;;  %717 = vmatprep.subr.bf16.mxu1 %v327_v36  ;;  %v362_v35 = vunpack.c.h.s8.bf16 %v170_v25  ;;  %v91_v36 = vsub.f32 %v75_v32, %v83_v33  ;;  %v189_v25 = vld [vmem:[#allocation8 + $0x288] sm:$0xff]  ;;  %v190_v32 = vld [vmem:[#allocation8 + $0x290] sm:$0xff] }
  0x94   :  { %v1194_v45 = vmul.f32 %v91_v36, %v91_v36 }
  0x95   :  { %554 = vmatpush1.bf16.msra.mxu0 %v324_v39  ;;  %718 = vmatpush1.bf16.msra.mxu1 %v326_v40  ;;  %v365_v39 = vunpack.c.l.s8.bf16 %v173_v30  ;;  %v367_v40 = vunpack.c.l.s8.bf16 %v175_v31  ;;  %v188_v31 = vld [vmem:[#allocation8 + $0x280] sm:$0xff] }
  0x96   :  { %555 = vmatprep.subr.bf16.mxu0 %v329_v41  ;;  %719 = vmatprep.subr.bf16.mxu1 %v331_v42  ;;  %v172_v41 = vld [vmem:[#allocation8 + $0x200] sm:$0xff]  ;;  %v174_v42 = vld [vmem:[#allocation8 + $0x210] sm:$0xff]  ;;  %107 = vst [vmem:[#allocation9 + $0x38] sm:$0xff] %v1194_v45  ;;  %v396_v33 = vunpack.c.l.s8.bf16 %v188_v31 }
  0x99   :  { %556 = vmatpush1.bf16.msra.mxu0 %v328_v46  ;;  %720 = vmatpush1.bf16.msra.mxu1 %v330_v47  ;;  %v494_v46 = vpack.c.bf16 %v1180_v19, %v1180_v19  ;;  %v1198_v47 = vmul.f32 %v90_v43, %v90_v43  ;;  %v368_v19 = vunpack.c.h.s8.bf16 %v172_v41  ;;  %v192_v43 = vld [vmem:[#allocation8 + $0x2a0] sm:$0xff] }
  0x9a   :  { %557 = vmatprep.subr.bf16.mxu0 %v333_v48  ;;  %721 = vmatprep.subr.bf16.mxu1 %v335_v49  ;;  %v364_v48 = vunpack.c.l.s8.bf16 %v172_v41  ;;  %v366_v49 = vunpack.c.l.s8.bf16 %v174_v42  ;;  %v405_v41 = vunpack.c.l.s8.bf16 %v193_v37 }
  0x9b   :  { %106 = vst [vmem:[#allocation9 + $0x30] sm:$0xff] %v1198_v47 }
  0x9d   :  { %558 = vmatpush1.bf16.msra.mxu0 %v332_v52  ;;  %722 = vmatpush1.bf16.msra.mxu1 %v334_v53  ;;  %v177_v52 = vld [vmem:[#allocation8 + $0x228] sm:$0xff]  ;;  %v179_v53 = vld [vmem:[#allocation8 + $0x238] sm:$0xff] }
  0x9e   :  { %559 = vmatprep.subr.bf16.mxu0 %v337_v54  ;;  %723 = vmatprep.subr.bf16.mxu1 %v339_v55  ;;  %v497_v54 = vpack.c.bf16 %v1186_v0, %v1186_v0  ;;  %v370_v55 = vunpack.c.h.s8.bf16 %v174_v42  ;;  %v373_v56 = vunpack.c.l.s8.bf16 %v177_v52  ;;  %v375_v57 = vunpack.c.l.s8.bf16 %v179_v53 }
  0x9f   :  { %v377_v0 = vunpack.c.h.s8.bf16 %v177_v52  ;;  %v379_v62 = vunpack.c.h.s8.bf16 %v179_v53  ;;  %v407_v42 = vunpack.c.l.s8.bf16 %v195_v38  ;;  %v197_v52 = vld [vmem:[#allocation8 + $0x2c8] sm:$0xff]  ;;  %v199_v53 = vld [vmem:[#allocation8 + $0x2d8] sm:$0xff] }
  0xa1   :  { %560 = vmatpush1.bf16.msra.mxu0 %v336_v58  ;;  %724 = vmatpush1.bf16.msra.mxu1 %v338_v59  ;;  %v176_v58 = vld [vmem:[#allocation8 + $0x220] sm:$0xff]  ;;  %v178_v59 = vld [vmem:[#allocation8 + $0x230] sm:$0xff] }
  0xa2   :  { %561 = vmatprep.subr.bf16.mxu0 %v341_v60  ;;  %725 = vmatprep.subr.bf16.mxu1 %v343_v61  ;;  %v372_v60 = vunpack.c.l.s8.bf16 %v176_v58  ;;  %v374_v61 = vunpack.c.l.s8.bf16 %v178_v59 }
  0xa5   :  { %562 = vmatpush1.bf16.msra.mxu0 %v340_v1  ;;  %726 = vmatpush1.bf16.msra.mxu1 %v342_v2  ;;  %v183_v1 = vld [vmem:[#allocation8 + $0x258] sm:$0xff]  ;;  %v376_v2 = vunpack.c.h.s8.bf16 %v176_v58  ;;  %v198_v58 = vld [vmem:[#allocation8 + $0x2d0] sm:$0xff] }
  0xa6   :  { %563 = vmatprep.subr.bf16.mxu0 %v345_v4  ;;  %727 = vmatprep.subr.bf16.mxu1 %v347_v5  ;;  %v378_v4 = vunpack.c.h.s8.bf16 %v178_v59  ;;  %v381_v5 = vunpack.c.l.s8.bf16 %v181_v63  ;;  %v383_v6 = vunpack.c.l.s8.bf16 %v183_v1  ;;  %v387_v11 = vunpack.c.h.s8.bf16 %v183_v1 }
  0xa9   :  { %564 = vmatpush1.bf16.msra.mxu0 %v344_v8  ;;  %728 = vmatpush1.bf16.msra.mxu1 %v346_v44  ;;  %v182_v8 = vld [vmem:[#allocation8 + $0x250] sm:$0xff]  ;;  %v380_v44 = vunpack.c.l.s8.bf16 %v180_v7 }
  0xaa   :  { %565 = vmatprep.subr.bf16.mxu0 %v349_v9  ;;  %729 = vmatprep.subr.bf16.mxu1 %v351_v10  ;;  %v382_v9 = vunpack.c.l.s8.bf16 %v182_v8  ;;  %v385_v10 = vunpack.c.h.s8.bf16 %v181_v63  ;;  %v203_v63 = vld [vmem:[#allocation8 + $0x2f8] sm:$0xff] }
  0xad   :  { %566 = vmatpush1.bf16.msra.mxu0 %v348_v13  ;;  %730 = vmatpush1.bf16.msra.mxu1 %v350_v15  ;;  %v187_v13 = vld [vmem:[#allocation8 + $0x278] sm:$0xff]  ;;  %v384_v15 = vunpack.c.h.s8.bf16 %v180_v7  ;;  %v202_v7 = vld [vmem:[#allocation8 + $0x2f0] sm:$0xff] }
  0xae   :  { %567 = vmatprep.subr.bf16.mxu0 %v353_v14  ;;  %731 = vmatprep.subr.bf16.mxu1 %v355_v16  ;;  %v386_v14 = vunpack.c.h.s8.bf16 %v182_v8  ;;  %v389_v16 = vunpack.c.l.s8.bf16 %v185_v12  ;;  %v391_v17 = vunpack.c.l.s8.bf16 %v187_v13  ;;  %v395_v24 = vunpack.c.h.s8.bf16 %v187_v13 }
  0xb1   :  { %568 = vmatpush1.bf16.msra.mxu0 %v352_v20  ;;  %732 = vmatpush1.bf16.msra.mxu1 %v354_v21  ;;  %v186_v20 = vld [vmem:[#allocation8 + $0x270] sm:$0xff]  ;;  %v388_v21 = vunpack.c.l.s8.bf16 %v184_v18 }
  0xb2   :  { %569 = vmatprep.subr.bf16.mxu0 %v357_v22  ;;  %733 = vmatprep.subr.bf16.mxu1 %v359_v23  ;;  %v390_v22 = vunpack.c.l.s8.bf16 %v186_v20  ;;  %v393_v23 = vunpack.c.h.s8.bf16 %v185_v12  ;;  %v207_v12 = vld [vmem:[#allocation8 + $0x318] sm:$0xff] }
  0xb5   :  { %570 = vmatpush1.bf16.msra.mxu0 %v356_v26  ;;  %734 = vmatpush1.bf16.msra.mxu1 %v358_v27  ;;  %v191_v26 = vld [vmem:[#allocation8 + $0x298] sm:$0xff]  ;;  %v392_v27 = vunpack.c.h.s8.bf16 %v184_v18  ;;  %v206_v18 = vld [vmem:[#allocation8 + $0x310] sm:$0xff] }
  0xb6   :  { %571 = vmatprep.subr.bf16.mxu0 %v361_v28  ;;  %735 = vmatprep.subr.bf16.mxu1 %v363_v29  ;;  %v394_v28 = vunpack.c.h.s8.bf16 %v186_v20  ;;  %v397_v29 = vunpack.c.l.s8.bf16 %v189_v25  ;;  %v399_v30 = vunpack.c.l.s8.bf16 %v191_v26  ;;  %v403_v36 = vunpack.c.h.s8.bf16 %v191_v26  ;;  %v211_v26 = vld [vmem:[#allocation8 + $0x338] sm:$0xff] }
  0xb7   :  { %v496_v20 = vpack.c.bf16 %v1188_v3, %v1188_v3 }
  0xb9   :  { %572 = vmatpush1.bf16.msra.mxu0 %v360_v34  ;;  %736 = vmatpush1.bf16.msra.mxu1 %v362_v35  ;;  %v398_v34 = vunpack.c.l.s8.bf16 %v190_v32  ;;  %v401_v35 = vunpack.c.h.s8.bf16 %v189_v25  ;;  %v209_v25 = vld [vmem:[#allocation8 + $0x328] sm:$0xff] }
  0xba   :  { %582 = vmatprep.subr.bf16.mxu0 %v365_v39  ;;  %746 = vmatprep.subr.bf16.mxu1 %v367_v40  ;;  %v400_v39 = vunpack.c.h.s8.bf16 %v188_v31  ;;  %v402_v40 = vunpack.c.h.s8.bf16 %v190_v32  ;;  %v437_v3 = vunpack.c.l.s8.bf16 %v209_v25  ;;  %v208_v31 = vld [vmem:[#allocation8 + $0x320] sm:$0xff]  ;;  %v210_v32 = vld [vmem:[#allocation8 + $0x330] sm:$0xff] }
  0xbc   :  { %574 = vmatmul.mubr.bf16.vlgmr.msra.gmra.mrb[0].mxu0 %v494_v46  ;;  %738 = vmatmul.mubr.bf16.vlgmr.msra.gmra.mrb[0].mxu1 %v494_v46  ;;  %v194_v46 = vld [vmem:[#allocation8 + $0x2b0] sm:$0xff] }
  0xbd   :  { %583 = vmatpush1.bf16.msra.mxu0 %v364_v48  ;;  %747 = vmatpush1.bf16.msra.mxu1 %v366_v49  ;;  %v404_v48 = vunpack.c.l.s8.bf16 %v192_v43  ;;  %v406_v49 = vunpack.c.l.s8.bf16 %v194_v46 }
  0xbe   :  { %584 = vmatprep.subr.bf16.mxu0 %v369_v50  ;;  %748 = vmatprep.subr.bf16.mxu1 %v371_v51  ;;  %v409_v50 = vunpack.c.h.s8.bf16 %v193_v37  ;;  %v411_v51 = vunpack.c.h.s8.bf16 %v195_v38  ;;  %v215_v37 = vld [vmem:[#allocation8 + $0x358] sm:$0xff]  ;;  %v440_v38 = vunpack.c.h.s8.bf16 %v208_v31 }
  0xbf   :  { %614 = vmatprep.mubr.bf16.mxu0 %v497_v54  ;;  %778 = vmatprep.mubr.bf16.mxu1 %v497_v54  ;;  %v408_v54 = vunpack.c.h.s8.bf16 %v192_v43  ;;  %v214_v43 = vld [vmem:[#allocation8 + $0x350] sm:$0xff] }
  0xc1   :  { %585 = vmatpush1.bf16.msra.mxu0 %v368_v19  ;;  %749 = vmatpush1.bf16.msra.mxu1 %v370_v55  ;;  %v410_v19 = vunpack.c.h.s8.bf16 %v194_v46  ;;  %v413_v55 = vunpack.c.l.s8.bf16 %v197_v52 }
  0xc2   :  { %586 = vmatprep.subr.bf16.mxu0 %v373_v56  ;;  %750 = vmatprep.subr.bf16.mxu1 %v375_v57  ;;  %v415_v56 = vunpack.c.l.s8.bf16 %v199_v53  ;;  %v196_v57 = vld [vmem:[#allocation8 + $0x2c0] sm:$0xff] }
  0xc3   :  { %v412_v59 = vunpack.c.l.s8.bf16 %v196_v57  ;;  %v416_v1 = vunpack.c.h.s8.bf16 %v196_v57  ;;  %v218_v57 = vld [vmem:[#allocation8 + $0x370] sm:$0xff] }
  0xc5   :  { %587 = vmatpush1.bf16.msra.mxu0 %v372_v60  ;;  %751 = vmatpush1.bf16.msra.mxu1 %v374_v61  ;;  %v414_v60 = vunpack.c.l.s8.bf16 %v198_v58  ;;  %v417_v61 = vunpack.c.h.s8.bf16 %v197_v52  ;;  %v219_v52 = vld [vmem:[#allocation8 + $0x378] sm:$0xff] }
  0xc6   :  { %588 = vmatprep.subr.bf16.mxu0 %v377_v0  ;;  %752 = vmatprep.subr.bf16.mxu1 %v379_v62  ;;  %v419_v0 = vunpack.c.h.s8.bf16 %v199_v53  ;;  %v201_v62 = vld [vmem:[#allocation8 + $0x2e8] sm:$0xff] }
  0xc9   :  { %589 = vmatpush1.bf16.msra.mxu0 %v376_v2  ;;  %753 = vmatpush1.bf16.msra.mxu1 %v378_v4  ;;  %v418_v2 = vunpack.c.h.s8.bf16 %v198_v58  ;;  %v421_v4 = vunpack.c.l.s8.bf16 %v201_v62 }
  0xca   :  { %590 = vmatprep.subr.bf16.mxu0 %v381_v5  ;;  %754 = vmatprep.subr.bf16.mxu1 %v383_v6  ;;  %v423_v5 = vunpack.c.l.s8.bf16 %v203_v63  ;;  %v200_v6 = vld [vmem:[#allocation8 + $0x2e0] sm:$0xff] }
  0xcb   :  { %v420_v8 = vunpack.c.l.s8.bf16 %v200_v6  ;;  %v424_v13 = vunpack.c.h.s8.bf16 %v200_v6  ;;  %v222_v6 = vld [vmem:[#allocation8 + $0x390] sm:$0xff] }
  0xcd   :  { %591 = vmatpush1.bf16.msra.mxu0 %v380_v44  ;;  %755 = vmatpush1.bf16.msra.mxu1 %v382_v9  ;;  %v422_v44 = vunpack.c.l.s8.bf16 %v202_v7  ;;  %v425_v9 = vunpack.c.h.s8.bf16 %v201_v62  ;;  %v223_v62 = vld [vmem:[#allocation8 + $0x398] sm:$0xff] }
  0xce   :  { %592 = vmatprep.subr.bf16.mxu0 %v385_v10  ;;  %756 = vmatprep.subr.bf16.mxu1 %v387_v11  ;;  %v427_v10 = vunpack.c.h.s8.bf16 %v203_v63  ;;  %v205_v11 = vld [vmem:[#allocation8 + $0x308] sm:$0xff] }
  0xd1   :  { %593 = vmatpush1.bf16.msra.mxu0 %v384_v15  ;;  %757 = vmatpush1.bf16.msra.mxu1 %v386_v14  ;;  %v426_v15 = vunpack.c.h.s8.bf16 %v202_v7  ;;  %v429_v14 = vunpack.c.l.s8.bf16 %v205_v11 }
  0xd2   :  { %594 = vmatprep.subr.bf16.mxu0 %v389_v16  ;;  %758 = vmatprep.subr.bf16.mxu1 %v391_v17  ;;  %v431_v16 = vunpack.c.l.s8.bf16 %v207_v12  ;;  %v204_v17 = vld [vmem:[#allocation8 + $0x300] sm:$0xff] }
  0xd5   :  { %595 = vmatpush1.bf16.msra.mxu0 %v388_v21  ;;  %759 = vmatpush1.bf16.msra.mxu1 %v390_v22  ;;  %v428_v21 = vunpack.c.l.s8.bf16 %v204_v17  ;;  %v430_v22 = vunpack.c.l.s8.bf16 %v206_v18 }
  0xd6   :  { %596 = vmatprep.subr.bf16.mxu0 %v393_v23  ;;  %760 = vmatprep.subr.bf16.mxu1 %v395_v24  ;;  %v433_v23 = vunpack.c.h.s8.bf16 %v205_v11  ;;  %v435_v24 = vunpack.c.h.s8.bf16 %v207_v12  ;;  %v227_v11 = vld [vmem:[#allocation8 + $0x3b8] sm:$0xff] }
  0xd9   :  { %597 = vmatpush1.bf16.msra.mxu0 %v392_v27  ;;  %761 = vmatpush1.bf16.msra.mxu1 %v394_v28  ;;  %v499_v27 = vpack.c.bf16 %v1194_v45, %v1194_v45  ;;  %v432_v28 = vunpack.c.h.s8.bf16 %v204_v17  ;;  %v441_v45 = vunpack.c.h.s8.bf16 %v209_v25  ;;  %v226_v17 = vld [vmem:[#allocation8 + $0x3b0] sm:$0xff] }
  0xda   :  { %598 = vmatprep.subr.bf16.mxu0 %v397_v29  ;;  %762 = vmatprep.subr.bf16.mxu1 %v399_v30  ;;  %v434_v29 = vunpack.c.h.s8.bf16 %v206_v18  ;;  %v439_v30 = vunpack.c.l.s8.bf16 %v211_v26 }
  0xdd   :  { %599 = vmatpush1.bf16.msra.mxu0 %v396_v33  ;;  %763 = vmatpush1.bf16.msra.mxu1 %v398_v34  ;;  %v436_v33 = vunpack.c.l.s8.bf16 %v208_v31  ;;  %v438_v34 = vunpack.c.l.s8.bf16 %v210_v32 }
  0xde   :  { %600 = vmatprep.subr.bf16.mxu0 %v401_v35  ;;  %764 = vmatprep.subr.bf16.mxu1 %v403_v36  ;;  %v443_v35 = vunpack.c.h.s8.bf16 %v211_v26  ;;  %v213_v36 = vld [vmem:[#allocation8 + $0x348] sm:$0xff]  ;;  %v474_v26 = vunpack.c.h.s8.bf16 %v226_v17 }
  0xe1   :  { %601 = vmatpush1.bf16.msra.mxu0 %v400_v39  ;;  %765 = vmatpush1.bf16.msra.mxu1 %v402_v40  ;;  %v442_v39 = vunpack.c.h.s8.bf16 %v210_v32  ;;  %v445_v40 = vunpack.c.l.s8.bf16 %v213_v36 }
  0xe2   :  { %602 = vmatprep.subr.bf16.mxu0 %v405_v41  ;;  %766 = vmatprep.subr.bf16.mxu1 %v407_v42  ;;  %v447_v41 = vunpack.c.l.s8.bf16 %v215_v37  ;;  %v212_v42 = vld [vmem:[#allocation8 + $0x340] sm:$0xff] }
  0xe3   :  { %v444_v46 = vunpack.c.l.s8.bf16 %v212_v42  ;;  %v448_v53 = vunpack.c.h.s8.bf16 %v212_v42 }
  0xe5   :  { %603 = vmatpush1.bf16.msra.mxu0 %v404_v48  ;;  %767 = vmatpush1.bf16.msra.mxu1 %v406_v49  ;;  %v446_v48 = vunpack.c.l.s8.bf16 %v214_v43  ;;  %v449_v49 = vunpack.c.h.s8.bf16 %v213_v36 }
  0xe6   :  { %604 = vmatprep.subr.bf16.mxu0 %v409_v50  ;;  %768 = vmatprep.subr.bf16.mxu1 %v411_v51  ;;  %v451_v50 = vunpack.c.h.s8.bf16 %v215_v37  ;;  %v217_v51 = vld [vmem:[#allocation8 + $0x368] sm:$0xff] }
  0xe9   :  { %605 = vmatpush1.bf16.msra.mxu0 %v408_v54  ;;  %769 = vmatpush1.bf16.msra.mxu1 %v410_v19  ;;  %v450_v54 = vunpack.c.h.s8.bf16 %v214_v43  ;;  %v453_v19 = vunpack.c.l.s8.bf16 %v217_v51 }
  0xea   :  { %606 = vmatprep.subr.bf16.mxu0 %v413_v55  ;;  %770 = vmatprep.subr.bf16.mxu1 %v415_v56  ;;  %v455_v55 = vunpack.c.l.s8.bf16 %v219_v52  ;;  %v216_v56 = vld [vmem:[#allocation8 + $0x360] sm:$0xff] }
  0xeb   :  { %v452_v58 = vunpack.c.l.s8.bf16 %v216_v56  ;;  %v456_v63 = vunpack.c.h.s8.bf16 %v216_v56 }
  0xed   :  { %607 = vmatpush1.bf16.msra.mxu0 %v412_v59  ;;  %771 = vmatpush1.bf16.msra.mxu1 %v414_v60  ;;  %v454_v59 = vunpack.c.l.s8.bf16 %v218_v57  ;;  %v457_v60 = vunpack.c.h.s8.bf16 %v217_v51  ;;  %v830_v51 = vlaneseq }
  0xee   :  { %608 = vmatprep.subr.bf16.mxu0 %v417_v61  ;;  %772 = vmatprep.subr.bf16.mxu1 %v419_v0  ;;  %v459_v61 = vunpack.c.h.s8.bf16 %v219_v52  ;;  %v221_v0 = vld [vmem:[#allocation8 + $0x388] sm:$0xff] }
  0xef   :  { %v831_v52 = vshrl.u32 %v830_v51, 7 }
  0xf1   :  { %609 = vmatpush1.bf16.msra.mxu0 %v416_v1  ;;  %773 = vmatpush1.bf16.msra.mxu1 %v418_v2  ;;  %v458_v1 = vunpack.c.h.s8.bf16 %v218_v57  ;;  %v461_v2 = vunpack.c.l.s8.bf16 %v221_v0  ;;  %v844_v56 = vsub.s32 3, %v831_v52  ;;  %v854_v57 = vld [vmem:[%s1238_s4] sm:$0xf]  ;;  %s1090_s4 = smov [#allocation9]  }
  0xf2   :  { %610 = vmatprep.subr.bf16.mxu0 %v421_v4  ;;  %774 = vmatprep.subr.bf16.mxu1 %v423_v5  ;;  %v463_v4 = vunpack.c.l.s8.bf16 %v223_v62  ;;  %v220_v5 = vld [vmem:[#allocation8 + $0x380] sm:$0xff] }
  0xf3   :  { %v460_v7 = vunpack.c.l.s8.bf16 %v220_v5  ;;  %v464_v12 = vunpack.c.h.s8.bf16 %v220_v5 }
  0xf5   :  { %611 = vmatpush1.bf16.msra.mxu0 %v420_v8  ;;  %775 = vmatpush1.bf16.msra.mxu1 %v422_v44  ;;  %v462_v8 = vunpack.c.l.s8.bf16 %v222_v6  ;;  %v465_v44 = vunpack.c.h.s8.bf16 %v221_v0 }
  0xf6   :  { %612 = vmatprep.subr.bf16.mxu0 %v425_v9  ;;  %776 = vmatprep.subr.bf16.mxu1 %v427_v10  ;;  %v467_v9 = vunpack.c.h.s8.bf16 %v223_v62  ;;  %v225_v10 = vld [vmem:[#allocation8 + $0x3a8] sm:$0xff] }
  0xf9   :  { %613 = vmatpush1.bf16.msra.mxu0 %v424_v13  ;;  %777 = vmatpush1.bf16.msra.mxu1 %v426_v15  ;;  %v466_v13 = vunpack.c.h.s8.bf16 %v222_v6  ;;  %v469_v15 = vunpack.c.l.s8.bf16 %v225_v10 }
  0xfa   :  { %623 = vmatprep.subr.bf16.mxu0 %v429_v14  ;;  %787 = vmatprep.subr.bf16.mxu1 %v431_v16  ;;  %v471_v14 = vunpack.c.l.s8.bf16 %v227_v11  ;;  %v224_v16 = vld [vmem:[#allocation8 + $0x3a0] sm:$0xff] }
  0xfb   :  { %v468_v18 = vunpack.c.l.s8.bf16 %v224_v16  ;;  %v472_v25 = vunpack.c.h.s8.bf16 %v224_v16 }
  0xfc   :  { %615 = vmatmul.mubr.bf16.vlgmr.msra.gmra.mrb[0].mxu0 %v496_v20  ;;  %779 = vmatmul.mubr.bf16.vlgmr.msra.gmra.mrb[0].mxu1 %v496_v20  ;;  %v470_v20 = vunpack.c.l.s8.bf16 %v226_v17 }
  0xfd   :  { %624 = vmatpush1.bf16.msra.mxu0 %v428_v21  ;;  %788 = vmatpush1.bf16.msra.mxu1 %v430_v22  ;;  %v473_v21 = vunpack.c.h.s8.bf16 %v225_v10  ;;  %v475_v22 = vunpack.c.h.s8.bf16 %v227_v11 }
  0xfe   :  { %625 = vmatprep.subr.bf16.mxu0 %v433_v23  ;;  %789 = vmatprep.subr.bf16.mxu1 %v435_v24  ;;  %v229_v23 = vld [vmem:[#allocation8 + $0x3c8] sm:$0xff]  ;;  %v231_v24 = vld [vmem:[#allocation8 + $0x3d8] sm:$0xff] }
  0xff   :  { %655 = vmatprep.mubr.bf16.mxu0 %v499_v27  ;;  %819 = vmatprep.mubr.bf16.mxu1 %v499_v27  ;;  %v477_v27 = vunpack.c.l.s8.bf16 %v229_v23  ;;  %v481_v32 = vunpack.c.h.s8.bf16 %v229_v23 }
 0x101   :  { %626 = vmatpush1.bf16.msra.mxu0 %v432_v28  ;;  %790 = vmatpush1.bf16.msra.mxu1 %v434_v29  ;;  %v479_v28 = vunpack.c.l.s8.bf16 %v231_v24  ;;  %v228_v29 = vld [vmem:[#allocation8 + $0x3c0] sm:$0xff] }
 0x102   :  { %627 = vmatprep.subr.bf16.mxu0 %v437_v3  ;;  %791 = vmatprep.subr.bf16.mxu1 %v439_v30  ;;  %v230_v3 = vld [vmem:[#allocation8 + $0x3d0] sm:$0xff]  ;;  %v476_v30 = vunpack.c.l.s8.bf16 %v228_v29 }
 0x103   :  { %v478_v31 = vunpack.c.l.s8.bf16 %v230_v3  ;;  %v482_v36 = vunpack.c.h.s8.bf16 %v230_v3 }
 0x105   :  { %628 = vmatpush1.bf16.msra.mxu0 %v436_v33  ;;  %792 = vmatpush1.bf16.msra.mxu1 %v438_v34  ;;  %v483_v33 = vunpack.c.h.s8.bf16 %v231_v24  ;;  %v233_v34 = vld [vmem:[#allocation8 + $0x3e8] sm:$0xff] }
 0x106   :  { %629 = vmatprep.subr.bf16.mxu0 %v441_v45  ;;  %793 = vmatprep.subr.bf16.mxu1 %v443_v35  ;;  %v235_v45 = vld [vmem:[#allocation8 + $0x3f8] sm:$0xff]  ;;  %v480_v35 = vunpack.c.h.s8.bf16 %v228_v29  ;;  %v485_v37 = vunpack.c.l.s8.bf16 %v233_v34  ;;  %v489_v43 = vunpack.c.h.s8.bf16 %v233_v34 }
 0x109   :  { %630 = vmatpush1.bf16.msra.mxu0 %v440_v38  ;;  %794 = vmatpush1.bf16.msra.mxu1 %v442_v39  ;;  %v487_v38 = vunpack.c.l.s8.bf16 %v235_v45  ;;  %v232_v39 = vld [vmem:[#allocation8 + $0x3e0] sm:$0xff] }
 0x10a   :  { %631 = vmatprep.subr.bf16.mxu0 %v445_v40  ;;  %795 = vmatprep.subr.bf16.mxu1 %v447_v41  ;;  %v234_v40 = vld [vmem:[#allocation8 + $0x3f0] sm:$0xff]  ;;  %v484_v41 = vunpack.c.l.s8.bf16 %v232_v39 }
 0x10b   :  { %v486_v42 = vunpack.c.l.s8.bf16 %v234_v40 }
 0x10d   :  { %632 = vmatpush1.bf16.msra.mxu0 %v444_v46  ;;  %796 = vmatpush1.bf16.msra.mxu1 %v446_v48  ;;  %v491_v46 = vunpack.c.h.s8.bf16 %v235_v45  ;;  %v488_v48 = vunpack.c.h.s8.bf16 %v232_v39 }
 0x10e   :  { %633 = vmatprep.subr.bf16.mxu0 %v449_v49  ;;  %797 = vmatprep.subr.bf16.mxu1 %v451_v50  ;;  %v490_v49 = vunpack.c.h.s8.bf16 %v234_v40  ;;  %v498_v50 = vpack.c.bf16 %v1198_v47, %v1198_v47 }
 0x111   :  { %634 = vmatpush1.bf16.msra.mxu0 %v448_v53  ;;  %798 = vmatpush1.bf16.msra.mxu1 %v450_v54  ;;  %v832_v53 = vsub.s32 0, %v831_v52  ;;  %v840_v54 = vsub.s32 2, %v831_v52 }
 0x112   :  { %635 = vmatprep.subr.bf16.mxu0 %v453_v19  ;;  %799 = vmatprep.subr.bf16.mxu1 %v455_v55  ;;  %v828_v19 = vld [vmem:[%s1237_s3] sm:$0xf]  ;;  %v836_v55 = vsub.s32 1, %v831_v52 }
 0x113   :  { %v841_v47 = vrot.slane %v828_v19, %v840_v54  ;;  %v867_v0 = vrot.slane %v854_v57, %v840_v54 }
 0x115   :  { %636 = vmatpush1.bf16.msra.mxu0 %v452_v58  ;;  %800 = vmatpush1.bf16.msra.mxu1 %v454_v59  ;;  %v833_v58 = vrot.slane %v828_v19, %v832_v53  ;;  %v837_v59 = vrot.slane %v828_v19, %v836_v55 }
 0x116   :  { %637 = vmatprep.subr.bf16.mxu0 %v457_v60  ;;  %801 = vmatprep.subr.bf16.mxu1 %v459_v61  ;;  %v845_v60 = vrot.slane %v828_v19, %v844_v56  ;;  %v859_v61 = vrot.slane %v854_v57, %v832_v53 }
 0x119   :  { %638 = vmatpush1.bf16.msra.mxu0 %v456_v63  ;;  %802 = vmatpush1.bf16.msra.mxu1 %v458_v1  ;;  %v863_v1 = vrot.slane %v854_v57, %v836_v55 }
 0x11a   :  { %639 = vmatprep.subr.bf16.mxu0 %v461_v2  ;;  %803 = vmatprep.subr.bf16.mxu1 %v463_v4  ;;  %v871_v2 = vrot.slane %v854_v57, %v844_v56 }
 0x11d   :  { %640 = vmatpush1.bf16.msra.mxu0 %v460_v7  ;;  %804 = vmatpush1.bf16.msra.mxu1 %v462_v8  ;;  %v892_v8 = vld [vmem:[%s1239_s5] sm:$0xf]  ;;  %s943_s5 = sshll.u32 %s1090_s4, 4  ;;  %s944_s5 = int_to_ptr.vmem [resolvable:$true] %s943_s5 }
 0x11e   :  { %641 = vmatprep.subr.bf16.mxu0 %v465_v44  ;;  %805 = vmatprep.subr.bf16.mxu1 %v467_v9  ;;  %v909_v3 = vrot.slane %v892_v8, %v844_v56  ;;  %s1056_s23 = scalar_lea.vmem %s944_s5, 1024  ;;  %p1061_p11 = scmp.lt.s32.totalorder %s944_s5, %s944_s5 }
 0x11f   :  { %p1057_p10 = scmp.ne.s32.totalorder %s944_s5, %s1056_s23  ;;  %p1062_p12 = scmp.lt.s32.totalorder %s1056_s23, %s1056_s23 }
 0x121   :  { %642 = vmatpush1.bf16.msra.mxu0 %v464_v12  ;;  %806 = vmatpush1.bf16.msra.mxu1 %v466_v13  ;;  %p1063_p13 = por %p1062_p12, %p1061_p11 }
 0x122   :  { %643 = vmatprep.subr.bf16.mxu0 %v469_v15  ;;  %807 = vmatprep.subr.bf16.mxu1 %v471_v14 }
 0x123   :  { %p1064_p0 = pnand %p1063_p13, %p1057_p10 }
 0x125   :  { %644 = vmatpush1.bf16.msra.mxu0 %v468_v18  ;;  %808 = vmatpush1.bf16.msra.mxu1 %v470_v20  ;;  %v897_v18 = vrot.slane %v892_v8, %v832_v53  ;;  %v901_v20 = vrot.slane %v892_v8, %v836_v55 }
 0x126   :  { %645 = vmatprep.subr.bf16.mxu0 %v473_v21  ;;  %809 = vmatprep.subr.bf16.mxu1 %v475_v22 }
 0x129   :  { %646 = vmatpush1.bf16.msra.mxu0 %v472_v25  ;;  %810 = vmatpush1.bf16.msra.mxu1 %v474_v26  ;;  %v905_v26 = vrot.slane %v892_v8, %v840_v54 }
 0x12a   :  { %647 = vmatprep.subr.bf16.mxu0 %v477_v27  ;;  %811 = vmatprep.subr.bf16.mxu1 %v479_v28 }
 0x12d   :  { %648 = vmatpush1.bf16.msra.mxu0 %v476_v30  ;;  %812 = vmatpush1.bf16.msra.mxu1 %v478_v31 }
 0x12e   :  { %649 = vmatprep.subr.bf16.mxu0 %v481_v32  ;;  %813 = vmatprep.subr.bf16.mxu1 %v483_v33 }
 0x131   :  { %650 = vmatpush1.bf16.msra.mxu0 %v480_v35  ;;  %814 = vmatpush1.bf16.msra.mxu1 %v482_v36  ;;  %v1089_v36 = vmov 0  }
 0x132   :  { %651 = vmatprep.subr.bf16.mxu0 %v485_v37  ;;  %815 = vmatprep.subr.bf16.mxu1 %v487_v38  ;;  %v957_v37 = vld [vmem:[#allocation2] ss:$0 sm:$0xff] }
 0x133   :  { %989 = vset.pattern.permute.xlu0 %v1089_v36 }
 0x135   :  { %652 = vmatpush1.bf16.msra.mxu0 %v484_v41  ;;  %816 = vmatpush1.bf16.msra.mxu1 %v486_v42 }
 0x136   :  { %653 = vmatprep.subr.bf16.mxu0 %v489_v43  ;;  %817 = vmatprep.subr.bf16.mxu1 %v491_v46 }
 0x139   :  { %654 = vmatpush1.bf16.msra.mxu0 %v488_v48  ;;  %818 = vmatpush1.bf16.msra.mxu1 %v490_v49 }
 0x13c   :  { %656 = vmatmul.mubr.bf16.vlgmr.msra.gmra.mrb[0].mxu0 %v498_v50  ;;  %820 = vmatmul.mubr.bf16.vlgmr.msra.gmra.mrb[0].mxu1 %v498_v50 }
 0x20f   :  { %v657_v62 = vpop.f32.mrb[0].mxu0  ;;  %v821_v63 = vpop.f32.mrb[0].mxu1 }
 0x210   :  { %v850_v4 = vmul.f32 %v833_v58, %v657_v62  ;;  %v852_v5 = vmul.f32 %v841_v47, %v821_v63  ;;  %v659_v6 = vpop.f32.mrb[1].mxu0  ;;  %v823_v7 = vpop.f32.mrb[1].mxu1 }
 0x211   :  { %v851_v44 = vmul.f32 %v837_v59, %v659_v6  ;;  %v853_v9 = vmul.f32 %v845_v60, %v823_v7  ;;  %v661_v10 = vpop.f32.mrb[2].mxu0  ;;  %v825_v11 = vpop.f32.mrb[2].mxu1 }
 0x212   :  { %v876_v12 = vadd.f32 %v859_v61, %v850_v4  ;;  %v878_v13 = vadd.f32 %v867_v0, %v852_v5  ;;  %v662_v15 = vpop.f32.mrb[3].mxu0  ;;  %v826_v14 = vpop.f32.mrb[3].mxu1 }
 0x213   :  { %v877_v16 = vadd.f32 %v863_v1, %v851_v44  ;;  %v879_v17 = vadd.f32 %v871_v2, %v853_v9 }
 0x214   :  { %vm880_vm0 = vcmp.ge.f32.partialorder %v876_v12, 0.0  ;;  %v884_v21 = vmul.f32 0.1, %v876_v12  ;;  %vm882_vm1 = vcmp.ge.f32.partialorder %v878_v13, 0.0  ;;  %v886_v22 = vmul.f32 0.1, %v878_v13 }
 0x215   :  { %vm881_vm2 = vcmp.ge.f32.partialorder %v877_v16, 0.0  ;;  %v885_v23 = vmul.f32 0.1, %v877_v16  ;;  %v887_v24 = vmul.f32 0.1, %v879_v17  ;;  %vm883_vm3 = vcmp.ge.f32.partialorder %v879_v17, 0.0 }
 0x216   :  { %v888_v25 = vsel %vm880_vm0, %v876_v12, %v884_v21  ;;  %v890_v28 = vsel %vm882_vm1, %v878_v13, %v886_v22 }
 0x217   :  { %v889_v27 = vsel %vm881_vm2, %v877_v16, %v885_v23  ;;  %v914_v29 = vmul.f32 %v897_v18, %v888_v25  ;;  %v891_v31 = vsel %vm883_vm3, %v879_v17, %v887_v24  ;;  %v916_v32 = vmul.f32 %v905_v26, %v890_v28 }
 0x218   :  { %v915_v30 = vmul.f32 %v901_v20, %v889_v27  ;;  %v917_v34 = vmul.f32 %v909_v3, %v891_v31 }
 0x21a   :  { %v918_v33 = vadd.f32 %v915_v30, %v914_v29 }
 0x21c   :  { %v919_v45 = vadd.f32 %v918_v33, %v916_v32 }
 0x21e   :  { %v920_v35 = vadd.f32 %v919_v45, %v917_v34 }
 0x220   :  { %921 = vadd.xlane.f32.xlu0 %v920_v35 }
 0x2ad   :  { %v922_v38 = vpop.xlane.xlu0 %921 }
 0x2ae   :  { %v930_v39 = vadd.f32 %v957_v37, %v922_v38 }
 0x2b0   :  { %933 = vperm.xlu0 %989, %v930_v39  }
 0x2b1   :  { %1067 = shalt.err (!%p1064_p0)
}
 0x2b2   :  { %s1068_s26 = scalar_lea.hbm %s1241_s7, 1024 }
 0x2b3   :  { %p1069_p1 = scmp.ne.s32.totalorder %s1241_s7, %s1068_s26  ;;  %p1072_p2 = scmp.lt.u32.totalorder %s1068_s26, %s1241_s7 }
 0x2b5   :  { %p1074_p3 = pnand %p1072_p2, %p1069_p1 }
 0x2b7   :  { %1077 = shalt.err (!%p1074_p3)
}
 0x2b8   :  { %946 = dma.vmem_to_hbm [thread:$0]  %s944_s5, 1024, %s1241_s7, [#allocation5]  }
 0x32f   :  { %v934_v40 = vpop.permute.xlu0 %933 }
 0x330   :  { %936 = vst [vmem:[%s1242_s8] sm:$0xff] %v934_v40 }
 0x331   :  { %1082 = dma.done.wait [#allocation5], 1024  }
 0x332   :  { %1083 = vsyncadd [#allocation5], 4294966272 }
 0x333   :  { %954 = vsyncpa [#allocation4], 1 }
 0x334   :  { %955 = vsyncpa [#allocation7], 1 }
 0x335   :  { %956 = vsyncpa [#allocation5], 1 }

</bundles_post_ra>
